<compile_context>
chip_gen: v7x
topology: tpu7x:2x2x1
jax: 0.10.0
libtpu: 0.0.40
codegen_flags: <defaults>
</compile_context>

<pallas_src>
import functools

import jax
import jax.numpy as jnp
from jax.experimental import pallas as pl
from jax.experimental.pallas import tpu as pltpu

HIDDEN = 100       # fc1 output features (from the PyTorch module)
HIDDEN_PAD = 128   # padded to exactly one lane group


def critic_kernel(xT_ref, w1p_ref, b1_ref, w2_ref, b2_ref, out_ref):
    # xT_ref : (S, TB)    transposed input tile (batch on lanes)
    # w1p_ref: (128, S)   fc1.weight zero-padded along the hidden dim
    # b1_ref : (128, 1)   fc1.bias as a zero-padded column
    # w2_ref : (128, 1)   state_value.weight as a zero-padded column
    # b2_ref : (1, 1)     state_value.bias, SMEM scalar
    # out_ref: (1, TB)    lane-dense value row for this batch tile
    hT = jnp.dot(w1p_ref[...], xT_ref[...],
                 preferred_element_type=jnp.float32)          # (128, TB) on MXU
    hT = jnp.maximum(hT + b1_ref[...], 0.0)                   # bias + ReLU (VPU)
    v = jnp.sum(hT * w2_ref[...], axis=0, keepdims=True)      # (1, TB): VPU mul + XLU reduce
    out_ref[...] = (v + b2_ref[0, 0]).astype(out_ref.dtype)   # unmasked lane-dense store


@functools.partial(jax.jit, static_argnames=("block_b",))
def critic_forward(x, w1, b1, w2, b2, *, block_b=None):
    """Critic forward.

    x : (B, S) float32
    w1: (100, S), b1: (100,)   -- fc1 params (PyTorch layout)
    w2: (1, 100), b2: (1,)     -- state_value params (PyTorch layout)
    returns (B, 1) float32
    """
    B, S = x.shape
    H = w1.shape[0]

    if block_b is None:
        # Smallest lane-aligned tile that covers B, capped for very large batches.
        block_b = min(1024, max(128, ((B + 127) // 128) * 128))
    nb = pl.cdiv(B, block_b)
    b_pad = nb * block_b

    # Layout plumbing (outside the kernel): zero-pad hidden 100 -> 128 and
    # transpose x so the batch dimension is lane-dense inside the kernel.
    w1p = jnp.zeros((HIDDEN_PAD, S), jnp.float32).at[:H, :].set(w1)
    b1c = jnp.zeros((HIDDEN_PAD, 1), jnp.float32).at[:H, 0].set(b1)
    w2c = jnp.zeros((HIDDEN_PAD, 1), jnp.float32).at[:H, 0].set(w2.reshape(H))
    b2s = jnp.asarray(b2, jnp.float32).reshape(1, 1)
    xT = jnp.zeros((S, b_pad), jnp.float32).at[:, :B].set(x.T)

    out = pl.pallas_call(
        critic_kernel,
        out_shape=jax.ShapeDtypeStruct((1, b_pad), jnp.float32),
        grid=(nb,),
        in_specs=[
            pl.BlockSpec((S, block_b), lambda i: (0, i)),          # x^T batch tile
            pl.BlockSpec((HIDDEN_PAD, S), lambda i: (0, 0)),       # resident fc1 weight
            pl.BlockSpec((HIDDEN_PAD, 1), lambda i: (0, 0)),       # resident fc1 bias
            pl.BlockSpec((HIDDEN_PAD, 1), lambda i: (0, 0)),       # resident w2 column
            pl.BlockSpec(memory_space=pltpu.MemorySpace.SMEM),     # b2 scalar in SMEM
        ],
        out_specs=pl.BlockSpec((1, block_b), lambda i: (0, i)),    # lane-dense value row
        compiler_params=pltpu.CompilerParams(
            dimension_semantics=("parallel",)),
    )(xT, w1p, b1c, w2c, b2s)

    # Drop batch padding, restore (B, 1).
    return out[0, :B].reshape(B, 1)


def init_critic_params(key, num_state, hidden=HIDDEN):
    """PyTorch nn.Linear default init: U[-1/sqrt(fan_in), 1/sqrt(fan_in)], PyTorch layout."""
    k1, k2, k3, k4 = jax.random.split(key, 4)
    bound1 = 1.0 / jnp.sqrt(jnp.float32(num_state))
    bound2 = 1.0 / jnp.sqrt(jnp.float32(hidden))
    w1 = jax.random.uniform(k1, (hidden, num_state), jnp.float32, -bound1, bound1)
    b1 = jax.random.uniform(k2, (hidden,), jnp.float32, -bound1, bound1)
    w2 = jax.random.uniform(k3, (1, hidden), jnp.float32, -bound2, bound2)
    b2 = jax.random.uniform(k4, (1,), jnp.float32, -bound2, bound2)
    return w1, b1, w2, b2


def critic_reference(x, w1, b1, w2, b2):
    h = jnp.maximum(x @ w1.T + b1, 0.0)
    return h @ w2.T + b2


if __name__ == "__main__":
    key = jax.random.PRNGKey(0)
    k_x, k_p, k_x2 = jax.random.split(key, 3)

    batch = 4
    num_state = 8

    x = jax.random.normal(k_x, (batch, num_state), jnp.float32)
    w1, b1, w2, b2 = init_critic_params(k_p, num_state)

    value = critic_forward(x, w1, b1, w2, b2)
    value = jax.block_until_ready(value)

    ref = critic_reference(x, w1, b1, w2, b2)
    assert value.shape == (batch, 1)
    assert jnp.allclose(value, ref, atol=1e-5, rtol=1e-5)

    # Exercise the multi-tile grid path (batch padding + parallel batch axis).
    big_batch = 300
    x2 = jax.random.normal(k_x2, (big_batch, num_state), jnp.float32)
    value2 = jax.block_until_ready(critic_forward(x2, w1, b1, w2, b2, block_b=128))
    ref2 = critic_reference(x2, w1, b1, w2, b2)
    assert value2.shape == (big_batch, 1)
    assert jnp.allclose(value2, ref2, atol=1e-5, rtol=1e-5)

    print("KERNEL_OK")
</pallas_src>

<mosaic_0001>
module attributes {stable_mosaic.version = 11 : i64} {
  func.func @critic_kernel(%arg0: i32, %arg1: memref<8x128xf32, #tpu.memory_space<vmem>>, %arg2: memref<128x8xf32, #tpu.memory_space<vmem>>, %arg3: memref<128x1xf32, #tpu.memory_space<vmem>>, %arg4: memref<128x1xf32, #tpu.memory_space<vmem>>, %arg5: memref<1x1xf32, #tpu.memory_space<smem>>, %arg6: memref<1x128xf32, #tpu.memory_space<vmem>>) attributes {dimension_semantics = [#tpu.dimension_semantics<parallel>], iteration_bounds = array<i64: 1>, scalar_prefetch = 0 : i64, scratch_operands = 0 : i64, tpu.core_type = #tpu.core_type<tc>, window_params = [{transform_indices = @transform_0, window_bounds = array<i64: 8, 128>}, {pipeline_mode = #tpu.pipeline_mode<synchronous>, transform_indices = @transform_1, window_bounds = array<i64: 128, 8>}, {pipeline_mode = #tpu.pipeline_mode<synchronous>, transform_indices = @transform_2, window_bounds = array<i64: 128, 1>}, {pipeline_mode = #tpu.pipeline_mode<synchronous>, transform_indices = @transform_3, window_bounds = array<i64: 128, 1>}, {transform_indices = @transform_4, window_bounds = array<i64: 1, 1>}, {transform_indices = @transform_5, window_bounds = array<i64: 1, 128>}]} {
    %c0 = arith.constant 0 : index
    %c0_0 = arith.constant 0 : index
    %0 = vector.load %arg2[%c0, %c0_0] : memref<128x8xf32, #tpu.memory_space<vmem>>, vector<128x8xf32>
    %c0_1 = arith.constant 0 : index
    %c0_2 = arith.constant 0 : index
    %1 = vector.load %arg1[%c0_1, %c0_2] : memref<8x128xf32, #tpu.memory_space<vmem>>, vector<8x128xf32>
    %cst = arith.constant dense<0.000000e+00> : vector<128x128xf32>
    %2 = tpu.matmul %0, %1, %cst {dimension_numbers = #tpu.dot_dimension_numbers<[1], [0], [0], [1], [0, 0, 1, 1], [], []>} : vector<128x8xf32>, vector<8x128xf32>, vector<128x128xf32> -> vector<128x128xf32>
    %c0_3 = arith.constant 0 : index
    %c0_4 = arith.constant 0 : index
    %3 = vector.load %arg3[%c0_3, %c0_4] : memref<128x1xf32, #tpu.memory_space<vmem>>, vector<128x1xf32>
    %4 = vector.broadcast %3 : vector<128x1xf32> to vector<128x128xf32>
    %5 = arith.addf %2, %4 : vector<128x128xf32>
    %cst_5 = arith.constant 0.000000e+00 : f32
    %6 = vector.broadcast %cst_5 : f32 to vector<128x128xf32>
    %7 = arith.maximumf %5, %6 : vector<128x128xf32>
    %c0_6 = arith.constant 0 : index
    %c0_7 = arith.constant 0 : index
    %8 = vector.load %arg4[%c0_6, %c0_7] : memref<128x1xf32, #tpu.memory_space<vmem>>, vector<128x1xf32>
    %9 = vector.broadcast %8 : vector<128x1xf32> to vector<128x128xf32>
    %10 = arith.mulf %7, %9 : vector<128x128xf32>
    %cst_8 = arith.constant dense<0.000000e+00> : vector<128xf32>
    %11 = vector.multi_reduction <add>, %10, %cst_8 [0] : vector<128x128xf32> to vector<128xf32>
    %12 = vector.shape_cast %11 : vector<128xf32> to vector<1x128xf32>
    %c0_9 = arith.constant 0 : index
    %c0_10 = arith.constant 0 : index
    %13 = memref.load %arg5[%c0_9, %c0_10] : memref<1x1xf32, #tpu.memory_space<smem>>
    %14 = vector.broadcast %13 : f32 to vector<1x128xf32>
    %15 = arith.addf %12, %14 : vector<1x128xf32>
    %c0_11 = arith.constant 0 : index
    %c0_12 = arith.constant 0 : index
    %16 = vector.load %arg6[%c0_11, %c0_12] : memref<1x128xf32, #tpu.memory_space<vmem>>, vector<1x128xf32>
    tpu.vector_store %arg6[%c0_11, %c0_12], %15 {strides = array<i32>} : memref<1x128xf32, #tpu.memory_space<vmem>>, vector<1x128xf32>,
    return
  }
  func.func @transform_0(%arg0: i32) -> (i32, i32) {
    %c0_i32 = arith.constant 0 : i32
    %c0_i32_0 = arith.constant 0 : i32
    return %c0_i32, %arg0 : i32, i32
  }
  func.func @transform_1(%arg0: i32) -> (i32, i32) {
    %c0_i32 = arith.constant 0 : i32
    %c0_i32_0 = arith.constant 0 : i32
    %c0_i32_1 = arith.constant 0 : i32
    return %c0_i32, %c0_i32_0 : i32, i32
  }
  func.func @transform_2(%arg0: i32) -> (i32, i32) {
    %c0_i32 = arith.constant 0 : i32
    %c0_i32_0 = arith.constant 0 : i32
    %c0_i32_1 = arith.constant 0 : i32
    return %c0_i32, %c0_i32_0 : i32, i32
  }
  func.func @transform_3(%arg0: i32) -> (i32, i32) {
    %c0_i32 = arith.constant 0 : i32
    %c0_i32_0 = arith.constant 0 : i32
    %c0_i32_1 = arith.constant 0 : i32
    return %c0_i32, %c0_i32_0 : i32, i32
  }
  func.func @transform_4(%arg0: i32) -> (i32, i32) {
    %c0_i32 = arith.constant 0 : i32
    %c0_i32_0 = arith.constant 0 : i32
    %c0_i32_1 = arith.constant 0 : i32
    return %c0_i32, %c0_i32_0 : i32, i32
  }
  func.func @transform_5(%arg0: i32) -> (i32, i32) {
    %c0_i32 = arith.constant 0 : i32
    %c0_i32_0 = arith.constant 0 : i32
    return %c0_i32, %arg0 : i32, i32
  }
}

</mosaic_0001>

<bundles_post_ra>
// kernel: critic_forward.1
= control target key start
LH: loop header
LB: loop body
LE: loop exit
PB: predicated region body
PF: predicated region fallthrough
CT: control target
= control target key end

     0   :  { %v549_v0 = vmov 0   ;;  %vm134_vm0 = vcmask 64512   ;;  %s749_s2 = inlined_call_operand.vmem [shape: f32[128,1], index: 2, kind: input, shape index: {}]   ;;  %s750_s0 = inlined_call_operand.vmem [shape: f32[8,128], index: 0, kind: input, shape index: {}]   ;;  %s751_s1 = inlined_call_operand.vmem [shape: f32[128,8], index: 1, kind: input, shape index: {}]   ;;  %s752_s3 = inlined_call_operand.vmem [shape: f32[128,1], index: 3, kind: input, shape index: {}]   ;;  %s753_s4 = inlined_call_operand.<no memory space> [shape: f32[1,1], index: 4, kind: input, shape index: {}]   ;;  %s754_s5 = inlined_call_operand.vmem [shape: f32[1,128], index: 5, kind: output, shape index: {}]  }
   0x1   :  { %547 = vset.pattern.permute.xlu0 %v549_v0  ;;  %548 = vset.pattern.permute.xlu1 %v549_v0  ;;  %v38_v1 = vld [vmem:[%s749_s2] sm:$0xff]  ;;  %v40_v3 = vld [vmem:[%s749_s2 + $0x10] sm:$0xff]  ;;  %v22_v6 = vld [vmem:[%s751_s1 + $0x8] sm:$0xff] }
   0x2   :  { %v37_v2 = vld [vmem:[%s750_s0] sm:$0xff]  ;;  %56 = vperm.xlu0 %547, %v38_v1   ;;  %66 = vperm.xlu1 %548, %v40_v3   ;;  %v30_v7 = vld [vmem:[%s751_s1 + $0x48] sm:$0xff]  ;;  %v41_v9 = vld [vmem:[%s749_s2 + $0x18] sm:$0xff] }
   0x3   :  { %518 = vmatprep.subr.mxu0 %v37_v2  ;;  %v21_v4 = vld [vmem:[%s751_s1] sm:$0xff]  ;;  %544 = vmatprep.subr.mxu1 %v37_v2  ;;  %v39_v8 = vld [vmem:[%s749_s2 + $0x8] sm:$0xff]  ;;  %v23_v10 = vld [vmem:[%s751_s1 + $0x10] sm:$0xff] }
   0x4   :  { %v29_v5 = vld [vmem:[%s751_s1 + $0x40] sm:$0xff]  ;;  %519 = vmatpush3.msra.mxu0 %v37_v2  ;;  %545 = vmatpush3.msra.mxu1 %v37_v2  ;;  %v31_v11 = vld [vmem:[%s751_s1 + $0x50] sm:$0xff]  ;;  %v24_v12 = vld [vmem:[%s751_s1 + $0x18] sm:$0xff] }
   0x5   :  { %520 = vmatprep.mubr.msk.f32.mxu0 %vm134_vm0, %v21_v4  ;;  %532 = vmatprep.mubr.msk.f32.mxu1 %vm134_vm0, %v29_v5  ;;  %v32_v13 = vld [vmem:[%s751_s1 + $0x58] sm:$0xff]  ;;  %v42_v14 = vld [vmem:[%s749_s2 + $0x20] sm:$0xff]  ;;  %v26_v18 = vld [vmem:[%s751_s1 + $0x28] sm:$0xff] }
   0x6   :  { %521 = vmatmul.mubr.msk.f32.vlgmr.msra.gmra.mrb[0].mxu0 %vm134_vm0, %v22_v6  ;;  %533 = vmatmul.mubr.msk.f32.vlgmr.msra.gmra.mrb[0].mxu1 %vm134_vm0, %v30_v7  ;;  %v344_v15 = vld [vmem:[%s752_s3] sm:$0xff]  ;;  %v34_v19 = vld [vmem:[%s751_s1 + $0x68] sm:$0xff]  ;;  %v346_v21 = vld [vmem:[%s752_s3 + $0x10] sm:$0xff] }
   0x7   :  { %61 = vperm.xlu0 %547, %v39_v8   ;;  %71 = vperm.xlu1 %548, %v41_v9   ;;  %v25_v16 = vld [vmem:[%s751_s1 + $0x20] sm:$0xff]  ;;  %v345_v20 = vld [vmem:[%s752_s3 + $0x8] sm:$0xff]  ;;  %v27_v22 = vld [vmem:[%s751_s1 + $0x30] sm:$0xff] }
   0x8   :  { %523 = vmatprep.mubr.msk.f32.mxu0 %vm134_vm0, %v23_v10  ;;  %535 = vmatprep.mubr.msk.f32.mxu1 %vm134_vm0, %v31_v11  ;;  %v33_v17 = vld [vmem:[%s751_s1 + $0x60] sm:$0xff]  ;;  %v35_v23 = vld [vmem:[%s751_s1 + $0x70] sm:$0xff]  ;;  %v28_v24 = vld [vmem:[%s751_s1 + $0x38] sm:$0xff] }
   0x9   :  { %v36_v25 = vld [vmem:[%s751_s1 + $0x78] sm:$0xff]  ;;  %v43_v26 = vld [vmem:[%s749_s2 + $0x28] sm:$0xff]  ;;  %v44_v28 = vld [vmem:[%s749_s2 + $0x30] sm:$0xff] }
   0xa   :  { %524 = vmatmul.mubr.msk.f32.gmra.mrb[2].mxu0 %vm134_vm0, %v24_v12  ;;  %536 = vmatmul.mubr.msk.f32.gmra.mrb[2].mxu1 %vm134_vm0, %v32_v13  ;;  %v347_v27 = vld [vmem:[%s752_s3 + $0x18] sm:$0xff]  ;;  %v348_v29 = vld [vmem:[%s752_s3 + $0x20] sm:$0xff]  ;;  %v349_v31 = vld [vmem:[%s752_s3 + $0x28] sm:$0xff] }
   0xb   :  { %76 = vperm.xlu0 %547, %v42_v14   ;;  %362 = vperm.xlu1 %548, %v344_v15   ;;  %v45_v30 = vld [vmem:[%s749_s2 + $0x38] sm:$0xff]  ;;  %v46_v32 = vld [vmem:[%s749_s2 + $0x40] sm:$0xff]  ;;  %v350_v33 = vld [vmem:[%s752_s3 + $0x30] sm:$0xff] }
   0xc   :  { %526 = vmatprep.mubr.msk.f32.mxu0 %vm134_vm0, %v25_v16  ;;  %538 = vmatprep.mubr.msk.f32.mxu1 %vm134_vm0, %v33_v17  ;;  %v47_v34 = vld [vmem:[%s749_s2 + $0x48] sm:$0xff]  ;;  %v351_v35 = vld [vmem:[%s752_s3 + $0x38] sm:$0xff]  ;;  %v48_v36 = vld [vmem:[%s749_s2 + $0x50] sm:$0xff] }
   0xd   :  { %v352_v37 = vld [vmem:[%s752_s3 + $0x40] sm:$0xff]  ;;  %v49_v38 = vld [vmem:[%s749_s2 + $0x58] sm:$0xff]  ;;  %v353_v39 = vld [vmem:[%s752_s3 + $0x48] sm:$0xff] }
   0xe   :  { %527 = vmatmul.mubr.msk.f32.gmra.mrb[4].mxu0 %vm134_vm0, %v26_v18  ;;  %539 = vmatmul.mubr.msk.f32.gmra.mrb[4].mxu1 %vm134_vm0, %v34_v19  ;;  %v50_v40 = vld [vmem:[%s749_s2 + $0x60] sm:$0xff]  ;;  %v354_v41 = vld [vmem:[%s752_s3 + $0x50] sm:$0xff]  ;;  %v51_v42 = vld [vmem:[%s749_s2 + $0x68] sm:$0xff] }
   0xf   :  { %367 = vperm.xlu0 %547, %v345_v20   ;;  %372 = vperm.xlu1 %548, %v346_v21   ;;  %v355_v43 = vld [vmem:[%s752_s3 + $0x58] sm:$0xff]  ;;  %v52_v44 = vld [vmem:[%s749_s2 + $0x70] sm:$0xff]  ;;  %v356_v45 = vld [vmem:[%s752_s3 + $0x60] sm:$0xff] }
  0x10   :  { %529 = vmatprep.mubr.msk.f32.mxu0 %vm134_vm0, %v27_v22  ;;  %541 = vmatprep.mubr.msk.f32.mxu1 %vm134_vm0, %v35_v23  ;;  %v53_v46 = vld [vmem:[%s749_s2 + $0x78] sm:$0xff]  ;;  %v357_v47 = vld [vmem:[%s752_s3 + $0x68] sm:$0xff]  ;;  %v358_v48 = vld [vmem:[%s752_s3 + $0x70] sm:$0xff] }
  0x11   :  { %v359_v49 = vld [vmem:[%s752_s3 + $0x78] sm:$0xff] }
  0x12   :  { %530 = vmatmul.mubr.msk.f32.gmra.mrb[6].mxu0 %vm134_vm0, %v28_v24  ;;  %542 = vmatmul.mubr.msk.f32.gmra.mrb[6].mxu1 %vm134_vm0, %v36_v25 }
  0x13   :  { %81 = vperm.xlu0 %547, %v43_v26   ;;  %377 = vperm.xlu1 %548, %v347_v27  }
  0x17   :  { %86 = vperm.xlu0 %547, %v44_v28   ;;  %382 = vperm.xlu1 %548, %v348_v29  }
  0x1b   :  { %91 = vperm.xlu0 %547, %v45_v30   ;;  %387 = vperm.xlu1 %548, %v349_v31  }
  0x1f   :  { %96 = vperm.xlu0 %547, %v46_v32   ;;  %392 = vperm.xlu1 %548, %v350_v33  }
  0x23   :  { %101 = vperm.xlu0 %547, %v47_v34   ;;  %397 = vperm.xlu1 %548, %v351_v35  }
  0x27   :  { %106 = vperm.xlu0 %547, %v48_v36   ;;  %402 = vperm.xlu1 %548, %v352_v37  }
  0x2b   :  { %111 = vperm.xlu0 %547, %v49_v38   ;;  %407 = vperm.xlu1 %548, %v353_v39  }
  0x2f   :  { %116 = vperm.xlu0 %547, %v50_v40   ;;  %412 = vperm.xlu1 %548, %v354_v41  }
  0x33   :  { %121 = vperm.xlu0 %547, %v51_v42   ;;  %417 = vperm.xlu1 %548, %v355_v43  }
  0x37   :  { %126 = vperm.xlu0 %547, %v52_v44   ;;  %422 = vperm.xlu1 %548, %v356_v45  }
  0x3b   :  { %131 = vperm.xlu0 %547, %v53_v46   ;;  %427 = vperm.xlu1 %548, %v357_v47  }
  0x3f   :  { %432 = vperm.xlu0 %547, %v358_v48   ;;  %437 = vperm.xlu1 %548, %v359_v49  }
  0x81   :  { %v57_v50 = vpop.permute.xlu0 %56  ;;  %v67_v51 = vpop.permute.xlu1 %66 }
  0x86   :  { %v62_v52 = vpop.permute.xlu0 %61  ;;  %v72_v53 = vpop.permute.xlu1 %71 }
  0x8a   :  { %v77_v54 = vpop.permute.xlu0 %76  ;;  %v363_v55 = vpop.permute.xlu1 %362 }
  0x8e   :  { %v368_v56 = vpop.permute.xlu0 %367  ;;  %v373_v57 = vpop.permute.xlu1 %372 }
  0x92   :  { %v82_v58 = vpop.permute.xlu0 %81  ;;  %v378_v59 = vpop.permute.xlu1 %377 }
  0x96   :  { %v87_v60 = vpop.permute.xlu0 %86  ;;  %v383_v61 = vpop.permute.xlu1 %382 }
  0x9a   :  { %v92_v62 = vpop.permute.xlu0 %91  ;;  %v388_v63 = vpop.permute.xlu1 %387 }
  0x9e   :  { %v97_v0 = vpop.permute.xlu0 %96  ;;  %v393_v1 = vpop.permute.xlu1 %392 }
  0xa2   :  { %v102_v2 = vpop.permute.xlu0 %101  ;;  %v398_v3 = vpop.permute.xlu1 %397 }
  0xa6   :  { %v107_v4 = vpop.permute.xlu0 %106  ;;  %v403_v5 = vpop.permute.xlu1 %402 }
  0xaa   :  { %v112_v6 = vpop.permute.xlu0 %111  ;;  %v408_v13 = vpop.permute.xlu1 %407 }
  0xae   :  { %v117_v24 = vpop.permute.xlu0 %116  ;;  %v413_v35 = vpop.permute.xlu1 %412 }
  0xb2   :  { %v122_v49 = vpop.permute.xlu0 %121 }
  0xd9   :  { %v522_v7 = vpop.f32.mrb[0].mxu0  ;;  %v534_v8 = vpop.f32.mrb[0].mxu1 }
  0xda   :  { %v255_v9 = vadd.f32 %v522_v7, %v62_v52  ;;  %v249_v10 = vpop.f32.mrb[1].mxu0  ;;  %v289_v11 = vpop.f32.mrb[1].mxu1 }
  0xdb   :  { %v250_v12 = vadd.f32 %v249_v10, %v57_v50  ;;  %v290_v45 = vadd.f32 %v289_v11, %v97_v0  ;;  %v295_v50 = vadd.f32 %v534_v8, %v102_v2 }
  0xdc   :  { %v329_v14 = vmax.f32 %v255_v9, 0.0 }
  0xdd   :  { %v328_v15 = vmax.f32 %v250_v12, 0.0  ;;  %v525_v16 = vpop.f32.mrb[2].mxu0  ;;  %v537_v17 = vpop.f32.mrb[2].mxu1  ;;  %v337_v7 = vmax.f32 %v295_v50, 0.0 }
  0xde   :  { %v441_v18 = vmul.f32 %v368_v56, %v329_v14  ;;  %v265_v19 = vadd.f32 %v525_v16, %v72_v53  ;;  %v259_v20 = vpop.f32.mrb[3].mxu0  ;;  %v299_v21 = vpop.f32.mrb[3].mxu1  ;;  %v336_v56 = vmax.f32 %v290_v45, 0.0  ;;  %v305_v9 = vadd.f32 %v537_v17, %v112_v6 }
  0xdf   :  { %v440_v22 = vmul.f32 %v363_v55, %v328_v15  ;;  %v260_v23 = vadd.f32 %v259_v20, %v67_v51  ;;  %v418_v55 = vpop.permute.xlu1 %417  ;;  %v127_v12 = vpop.permute.xlu0 %126  ;;  %v449_v2 = vmul.f32 %v408_v13, %v337_v7 }
  0xe0   :  { %v331_v26 = vmax.f32 %v265_v19, 0.0  ;;  %v448_v0 = vmul.f32 %v403_v5, %v336_v56 }
  0xe1   :  { %v456_v25 = vadd.f32 %v441_v18, %v440_v22  ;;  %v330_v27 = vmax.f32 %v260_v23, 0.0  ;;  %v528_v28 = vpop.f32.mrb[4].mxu0  ;;  %v540_v29 = vpop.f32.mrb[4].mxu1 }
  0xe2   :  { %v275_v30 = vadd.f32 %v528_v28, %v82_v58  ;;  %v269_v31 = vpop.f32.mrb[5].mxu0  ;;  %v309_v32 = vpop.f32.mrb[5].mxu1  ;;  %v443_v36 = vmul.f32 %v378_v59, %v331_v26  ;;  %v315_v8 = vadd.f32 %v540_v29, %v122_v49 }
  0xe3   :  { %v442_v33 = vmul.f32 %v373_v57, %v330_v27  ;;  %v270_v34 = vadd.f32 %v269_v31, %v77_v54  ;;  %v300_v57 = vadd.f32 %v299_v21, %v107_v4  ;;  %v310_v11 = vadd.f32 %v309_v32, %v117_v24  ;;  %v423_v14 = vpop.permute.xlu1 %422 }
  0xe4   :  { %v333_v38 = vmax.f32 %v275_v30, 0.0  ;;  %v341_v21 = vmax.f32 %v315_v8, 0.0 }
  0xe5   :  { %v457_v37 = vadd.f32 %v456_v25, %v442_v33  ;;  %v332_v39 = vmax.f32 %v270_v34, 0.0  ;;  %v531_v40 = vpop.f32.mrb[6].mxu0  ;;  %v543_v41 = vpop.f32.mrb[6].mxu1  ;;  %v340_v18 = vmax.f32 %v310_v11, 0.0 }
  0xe6   :  { %v285_v42 = vadd.f32 %v531_v40, %v92_v62  ;;  %v279_v43 = vpop.f32.mrb[7].mxu0  ;;  %v319_v44 = vpop.f32.mrb[7].mxu1  ;;  %v445_v51 = vmul.f32 %v388_v63, %v333_v38  ;;  %v339_v63 = vmax.f32 %v305_v9, 0.0  ;;  %v478_v38 = vstv %s753_s4 }
  0xe7   :  { %v444_v46 = vmul.f32 %v383_v61, %v332_v39  ;;  %v458_v47 = vadd.f32 %v457_v37, %v443_v36  ;;  %v280_v48 = vadd.f32 %v279_v43, %v87_v60  ;;  %v338_v61 = vmax.f32 %v300_v57, 0.0  ;;  %v428_v17 = vpop.permute.xlu1 %427 }
  0xe8   :  { %v335_v53 = vmax.f32 %v285_v42, 0.0  ;;  %v320_v4 = vadd.f32 %v319_v44, %v127_v12  ;;  %v451_v20 = vmul.f32 %v418_v55, %v339_v63  ;;  %v452_v22 = vmul.f32 %v423_v14, %v340_v18 }
  0xe9   :  { %v459_v52 = vadd.f32 %v458_v47, %v444_v46  ;;  %v334_v54 = vmax.f32 %v280_v48, 0.0  ;;  %v450_v16 = vmul.f32 %v413_v35, %v338_v61  ;;  %v453_v24 = vmul.f32 %v428_v17, %v341_v21 }
  0xea   :  { %v447_v62 = vmul.f32 %v398_v3, %v335_v53  ;;  %v342_v5 = vmax.f32 %v320_v4, 0.0 }
  0xeb   :  { %v446_v58 = vmul.f32 %v393_v1, %v334_v54  ;;  %v460_v59 = vadd.f32 %v459_v52, %v445_v51  ;;  %v132_v1 = vpop.permute.xlu0 %131  ;;  %v438_v29 = vpop.permute.xlu1 %437 }
  0xec   :  { %v325_v6 = vadd.f32 %v543_v41, %v132_v1 }
  0xed   :  { %v461_v10 = vadd.f32 %v460_v59, %v446_v58 }
  0xee   :  { %v343_v25 = vmax.f32 %v325_v6, 0.0 }
  0xef   :  { %v462_v60 = vadd.f32 %v461_v10, %v447_v62  ;;  %v433_v13 = vpop.permute.xlu0 %432 }
  0xf0   :  { %v454_v27 = vmul.f32 %v433_v13, %v342_v5  ;;  %v455_v30 = vmul.f32 %v438_v29, %v343_v25 }
  0xf1   :  { %v463_v15 = vadd.f32 %v462_v60, %v448_v0 }
  0xf3   :  { %v464_v19 = vadd.f32 %v463_v15, %v449_v2 }
  0xf5   :  { %v465_v3 = vadd.f32 %v464_v19, %v450_v16 }
  0xf7   :  { %v466_v23 = vadd.f32 %v465_v3, %v451_v20 }
  0xf9   :  { %v467_v26 = vadd.f32 %v466_v23, %v452_v22 }
  0xfb   :  { %v468_v28 = vadd.f32 %v467_v26, %v453_v24 }
  0xfd   :  { %v469_v31 = vadd.f32 %v468_v28, %v454_v27 }
  0xff   :  { %v470_v32 = vadd.f32 %v469_v31, %v455_v30 }
 0x101   :  { %v471_v33 = vrot.slane %v470_v32, 4 }
 0x103   :  { %v472_v34 = vadd.f32 %v471_v33, %v470_v32 }
 0x105   :  { %v473_v35 = vrot.slane %v472_v34, 2 }
 0x107   :  { %v474_v36 = vadd.f32 %v473_v35, %v472_v34 }
 0x109   :  { %v475_v37 = vrot.slane %v474_v36, 1 }
 0x10b   :  { %v476_v39 = vadd.f32 %v475_v37, %v474_v36 }
 0x10d   :  { %v479_v40 = vadd.f32 %v478_v38, %v476_v39 }
 0x10f   :  { %480 = vst [vmem:[%s754_s5] sm:$0x1] %v479_v40 }

</bundles_post_ra>
